<compile_context>
chip_gen: v7x
topology: tpu7x:2x2x1
jax: 0.10.0
libtpu: 0.0.40
codegen_flags: <defaults>
</compile_context>

<pallas_src>
import numpy as np
import jax
import jax.numpy as jnp
from jax.experimental import pallas as pl
from jax.experimental.pallas import tpu as pltpu

EPS = float(np.finfo(np.float32).tiny)   # matches the torch t_eps buffer (f32 tiny)

LANES = 128
TARGET_BLOCK_ELEMS = 1024 * 1024         # ~4 MiB of f32 per block


def _safe_log_kernel(t_ref, o_ref):
    # Widen to the promoted dtype (VPU) -> clamp (VPU) -> log (EUP) -> store.
    # NOTE: in a ragged last grid block, lanes past the array end may hold
    # stale VMEM garbage; log(max(eps, garbage)) can be NaN/-inf there, but
    # those lanes are never stored, so do NOT add an extra mask (it would
    # only add VPU work).
    t = t_ref[...].astype(o_ref.dtype)
    eps = jnp.asarray(EPS, dtype=o_ref.dtype)
    o_ref[...] = jnp.log(jnp.maximum(eps, t))


def _num_tensorcores() -> int:
    """Best-effort count of TensorCores sharing one Pallas grid on this chip."""
    try:
        kind = jax.devices()[0].device_kind.lower()
    except Exception:
        return 1
    # v7x (2 TCs/chip) and megacore v4 / v5p share a 'parallel' grid across 2 cores.
    if "7" in kind or "v4" in kind or "v5p" in kind:
        return 2
    return 1


def _sublane_pack(dtype) -> int:
    """Native sublane packing: 8 for 4-byte, 16 for 2-byte, 32 for 1-byte dtypes."""
    itemsize = jnp.dtype(dtype).itemsize
    return max(8, 32 // max(1, itemsize))


def _safe_log_flat(flat: jax.Array, out_dtype) -> jax.Array:
    """log(max(eps, x)) on a flat vector whose length is a multiple of 128."""
    n = flat.size

    # Widest lane count that divides numel (prefer >= one sublane-tile of rows).
    cols = None
    for c in (1024, 512, 256, 128):
        if n % c == 0 and n // c >= 8:
            cols = c
            break
    if cols is None:
        for c in (1024, 512, 256, 128):
            if n % c == 0:
                cols = c
                break
    assert cols is not None  # caller guarantees n % 128 == 0
    rows = n // cols
    x2d = flat.reshape(rows, cols)

    sub = max(_sublane_pack(flat.dtype), _sublane_pack(out_dtype))
    tile_rows = max(sub, (TARGET_BLOCK_ELEMS // cols) // sub * sub)
    rows_rounded = pl.cdiv(rows, sub) * sub
    num_tc = _num_tensorcores()
    if tile_rows >= rows_rounded:
        if num_tc >= 2 and rows_rounded >= 4 * sub:
            # >=4 blocks so each TensorCore gets >=2 pipelined steps (DMA overlap).
            tile_rows = max(sub, (rows // 4) // sub * sub)
        else:
            # Single TensorCore: one block, no extra step boundaries.
            tile_rows = rows
    grid = (pl.cdiv(rows, tile_rows),)

    in_bytes = tile_rows * cols * jnp.dtype(flat.dtype).itemsize
    out_bytes = tile_rows * cols * jnp.dtype(out_dtype).itemsize
    # Double-buffered in+out blocks plus headroom; safe on v5e/v6e/v7x.
    vmem_limit = int(2 * (in_bytes + out_bytes) + (4 << 20))

    cost = pl.CostEstimate(
        flops=n,
        transcendentals=n,
        bytes_accessed=n * jnp.dtype(flat.dtype).itemsize
        + n * jnp.dtype(out_dtype).itemsize,
    )

    out2d = pl.pallas_call(
        _safe_log_kernel,
        out_shape=jax.ShapeDtypeStruct((rows, cols), out_dtype),
        grid_spec=pltpu.PrefetchScalarGridSpec(
            num_scalar_prefetch=0,
            grid=grid,
            in_specs=[pl.BlockSpec((tile_rows, cols), lambda i: (i, 0))],
            out_specs=pl.BlockSpec((tile_rows, cols), lambda i: (i, 0)),
        ),
        compiler_params=pltpu.CompilerParams(
            dimension_semantics=("parallel",),
            vmem_limit_bytes=vmem_limit,
        ),
        cost_estimate=cost,
    )(x2d)
    return out2d.reshape(-1)


def safe_log(t: jax.Array) -> jax.Array:
    """Elementwise log(max(eps, t)) with torch-style type promotion."""
    orig_shape = t.shape
    if jnp.issubdtype(t.dtype, jnp.floating):
        out_dtype = jnp.promote_types(t.dtype, jnp.float32)
    else:
        out_dtype = jnp.float32
    n = int(t.size)
    flat = t.reshape(-1)

    tail = n % LANES
    n_main = n - tail

    if n_main == 0:
        # Tiny (<128 elems): plain jnp, a kernel launch would be pure overhead.
        eps = jnp.asarray(EPS, dtype=out_dtype)
        return jnp.log(jnp.maximum(eps, flat.astype(out_dtype))).reshape(orig_shape)

    main = _safe_log_flat(flat[:n_main] if tail else flat, out_dtype)
    if tail:
        # Rare non-multiple-of-128 path: <=127-element tail with plain jnp
        # (avoids the old pad + slice extra HBM passes).
        eps = jnp.asarray(EPS, dtype=out_dtype)
        tail_out = jnp.log(jnp.maximum(eps, flat[n_main:].astype(out_dtype)))
        return jnp.concatenate([main, tail_out]).reshape(orig_shape)
    return main.reshape(orig_shape)   # free bitcast in the common path


if __name__ == "__main__":
    key = jax.random.PRNGKey(0)
    k1, k2 = jax.random.split(key)

    # Small NCHW-like input consistent with the module's usage (IoU-loss scores).
    x = jax.random.uniform(k1, (2, 4, 16, 16), dtype=jnp.float32,
                           minval=-1.0, maxval=2.0)
    y = safe_log(x)
    jax.block_until_ready(y)
    y_ref = jnp.log(jnp.maximum(jnp.float32(EPS), x))
    np.testing.assert_allclose(np.asarray(y), np.asarray(y_ref),
                               rtol=1e-6, atol=1e-6)

    # Also exercise the rare non-multiple-of-128 path (prefix kernel + jnp tail).
    x2 = jax.random.uniform(k2, (2, 200), dtype=jnp.float32,
                            minval=-1.0, maxval=2.0)
    y2 = safe_log(x2)
    jax.block_until_ready(y2)
    y2_ref = jnp.log(jnp.maximum(jnp.float32(EPS), x2))
    np.testing.assert_allclose(np.asarray(y2), np.asarray(y2_ref),
                               rtol=1e-6, atol=1e-6)

    print("KERNEL_OK")
</pallas_src>

<mosaic_0001>
module attributes {stable_mosaic.version = 11 : i64} {
  func.func @_safe_log_kernel(%arg0: i32, %arg1: memref<8x256xf32, #tpu.memory_space<vmem>>, %arg2: memref<8x256xf32, #tpu.memory_space<vmem>>) attributes {dimension_semantics = [#tpu.dimension_semantics<parallel>], iteration_bounds = array<i64: 1>, scalar_prefetch = 0 : i64, scratch_operands = 0 : i64, tpu.core_type = #tpu.core_type<tc>, window_params = [{transform_indices = @transform_0, window_bounds = array<i64: 8, 256>}, {transform_indices = @transform_1, window_bounds = array<i64: 8, 256>}]} {
    %c0 = arith.constant 0 : index
    %c0_0 = arith.constant 0 : index
    %0 = vector.load %arg1[%c0, %c0_0] : memref<8x256xf32, #tpu.memory_space<vmem>>, vector<8x256xf32>
    %cst = arith.constant 1.17549435E-38 : f32
    %1 = vector.broadcast %cst : f32 to vector<8x256xf32>
    %2 = arith.maximumf %1, %0 : vector<8x256xf32>
    %3 = math.log %2 : vector<8x256xf32>
    %c0_1 = arith.constant 0 : index
    %c0_2 = arith.constant 0 : index
    %4 = vector.load %arg2[%c0_1, %c0_2] : memref<8x256xf32, #tpu.memory_space<vmem>>, vector<8x256xf32>
    tpu.vector_store %arg2[%c0_1, %c0_2], %3 {strides = array<i32>} : memref<8x256xf32, #tpu.memory_space<vmem>>, vector<8x256xf32>,
    return
  }
  func.func @transform_0(%arg0: i32) -> (i32, i32) {
    %c0_i32 = arith.constant 0 : i32
    %c0_i32_0 = arith.constant 0 : i32
    return %arg0, %c0_i32 : i32, i32
  }
  func.func @transform_1(%arg0: i32) -> (i32, i32) {
    %c0_i32 = arith.constant 0 : i32
    %c0_i32_0 = arith.constant 0 : i32
    return %arg0, %c0_i32 : i32, i32
  }
}

</mosaic_0001>

<bundles_post_ra>
// kernel: tpu_custom_call.1
= control target key start
LH: loop header
LB: loop body
LE: loop exit
PB: predicated region body
PF: predicated region fallthrough
CT: control target
= control target key end

     0   :  { %6 = vsyncpa [#allocation3], 0  ;;  %s136_s0 = inlined_call_operand.hbm [shape: f32[8,256], index: 0, kind: input, shape index: {}]   ;;  %s137_s1 = inlined_call_operand.hbm [shape: f32[8,256], index: 1, kind: output, shape index: {}]  }
   0x1   :  { %7 = vsyncpa [#allocation4], 0  ;;  %s100_s6 = smov [#allocation2]   ;;  %s52_s10 = scalar_lea.hbm %s136_s0, 256 }
   0x2   :  { %s14_s7 = sshll.u32 %s100_s6, 4  ;;  %p53_p0 = scmp.ne.s32.totalorder %s136_s0, %s52_s10  ;;  %s15_s7 = int_to_ptr.vmem [resolvable:$true] %s14_s7 }
   0x3   :  { %p56_p1 = scmp.lt.u32.totalorder %s52_s10, %s136_s0 }
   0x5   :  { %p58_p2 = pnand %p56_p1, %p53_p0 }
   0x7   :  { %61 = shalt.err (!%p58_p2)
}
   0x8   :  { %s62_s15 = scalar_lea.vmem %s15_s7, 256  ;;  %p67_p4 = scmp.lt.s32.totalorder %s15_s7, %s15_s7 }
   0x9   :  { %p63_p3 = scmp.ne.s32.totalorder %s15_s7, %s62_s15  ;;  %p68_p5 = scmp.lt.s32.totalorder %s62_s15, %s62_s15 }
   0xb   :  { %p69_p6 = por %p68_p5, %p67_p4 }
   0xd   :  { %p70_p7 = pnand %p69_p6, %p63_p3 }
   0xf   :  { %73 = shalt.err (!%p70_p7)
}
  0x10   :  { %17 = dma.hbm_to_vmem [thread:$0]  %s136_s0, 256, %s15_s7, [#allocation3]  }
  0x11   :  { %96 = dma.done.wait [#allocation3], 256  }
  0x12   :  { %97 = vsyncadd [#allocation3], 4294967040  ;;  %v21_v0 = vld [vmem:[#allocation2] sm:$0xff]  ;;  %v22_v1 = vld [vmem:[#allocation2 + $0x8] sm:$0xff]  ;;  %s101_s18 = smov [#allocation5]  }
  0x13   :  { %v23_v2 = vmax.f32 %v21_v0, 1.1754944e-38  ;;  %v24_v3 = vmax.f32 %v22_v1, 1.1754944e-38  ;;  %s37_s19 = sshll.u32 %s101_s18, 4  ;;  %s38_s19 = int_to_ptr.vmem [resolvable:$true] %s37_s19 }
  0x14   :  { %s74_s20 = scalar_lea.vmem %s38_s19, 256  ;;  %p79_p9 = scmp.lt.s32.totalorder %s38_s19, %s38_s19 }
  0x15   :  { %48 = vlog2.f32 %v23_v2  ;;  %p75_p8 = scmp.ne.s32.totalorder %s38_s19, %s74_s20  ;;  %p80_p10 = scmp.lt.s32.totalorder %s74_s20, %s74_s20 }
  0x16   :  { %50 = vlog2.f32 %v24_v3 }
  0x17   :  { %p81_p11 = por %p80_p10, %p79_p9 }
  0x19   :  { %p82_p12 = pnand %p81_p11, %p75_p8 }
  0x1f   :  { %v49_v4 = vpop.eup %48 }
  0x20   :  { %v51_v5 = vpop.eup %50  ;;  %v26_v6 = vmul.f32 0.6931472, %v49_v4 }
  0x21   :  { %v28_v7 = vmul.f32 0.6931472, %v51_v5 }
  0x22   :  { %29 = vst [vmem:[#allocation5] sm:$0xff] %v26_v6 }
  0x23   :  { %30 = vst [vmem:[#allocation5 + $0x8] sm:$0xff] %v28_v7 }
  0x24   :  { %85 = shalt.err (!%p82_p12)
}
  0x25   :  { %s86_s22 = scalar_lea.hbm %s137_s1, 256 }
  0x26   :  { %p87_p13 = scmp.ne.s32.totalorder %s137_s1, %s86_s22  ;;  %p90_p0 = scmp.lt.u32.totalorder %s86_s22, %s137_s1 }
  0x28   :  { %p92_p1 = pnand %p90_p0, %p87_p13 }
  0x2a   :  { %95 = shalt.err (!%p92_p1)
}
  0x2b   :  { %40 = dma.vmem_to_hbm [thread:$0]  %s38_s19, 256, %s137_s1, [#allocation4]  }
  0x2c   :  { %98 = dma.done.wait [#allocation4], 256  }
  0x2d   :  { %99 = vsyncadd [#allocation4], 4294967040 }
  0x2e   :  { %44 = vsyncpa [#allocation3], 1 }
  0x2f   :  { %45 = vsyncpa [#allocation4], 1 }

</bundles_post_ra>
